<compile_context>
chip_gen: v5e
topology: v5e:2x2
jax: 0.10.0
libtpu: 0.0.40
codegen_flags: <defaults>
</compile_context>

<pallas_src>
import functools

import jax
import jax.numpy as jnp
from jax import lax
from jax.experimental import pallas as pl
from jax.experimental.pallas import tpu as pltpu


# ----------------------------------------------------------------------------
# Fused Pallas kernel: conv3x3 + BN + ReLU + conv3x3 + BN + residual + ReLU
# ----------------------------------------------------------------------------
def _basic_block_kernel(x_ref, w1_ref, b1_ref, w2_ref, b2_ref, o_ref,
                        xpad_ref, hpad_ref, *, W, HW, HWp, pad, split_k):
    Cp = xpad_ref.shape[0]
    B = x_ref.shape[0]
    sdtype = xpad_ref.dtype

    # Zero the halos once per grid step (the per-image data writes below only
    # touch [pad, pad + HWp), so the halos stay clean across the B images).
    zeros_halo = jnp.zeros((Cp, pad), sdtype)
    xpad_ref[:, :pad] = zeros_halo
    xpad_ref[:, pad + HWp:] = zeros_halo
    hpad_ref[:, :pad] = zeros_halo
    hpad_ref[:, pad + HWp:] = zeros_halo

    # Border masks, hoisted and pre-broadcast once (JAX does not CSE
    # broadcast_in_dim; per-tap wheres would otherwise re-broadcast).
    col = lax.broadcasted_iota(jnp.int32, (1, HWp), 1)
    colw = col % W
    mask_l = jnp.broadcast_to(colw >= 1, (Cp, HWp))       # tap dx == 0
    mask_r = jnp.broadcast_to(colw <= W - 2, (Cp, HWp))   # tap dx == 2
    mask_tail = (jnp.broadcast_to(col < HW, (Cp, HWp))
                 if HWp != HW else None)                  # lanes past H*W

    # Per-channel biases, pre-broadcast once.
    bias1 = jnp.broadcast_to(b1_ref[...], (Cp, HWp))
    bias2 = jnp.broadcast_to(b2_ref[...], (Cp, HWp))

    def tap(src_ref, dy, dx):
        # Tap (dy, dx) of the 3x3 stencil == static lane-offset slice of the
        # zero-haloed flattened row.  Out-of-image rows land in the zero halo
        # (or the zeroed tail); out-of-row columns are masked.
        shift = (dy - 1) * W + (dx - 1)
        patch = src_ref[:, pad + shift: pad + shift + HWp]
        if dx == 0:
            patch = jnp.where(mask_l, patch, 0)
        elif dx == 2:
            patch = jnp.where(mask_r, patch, 0)
        return patch

    def conv3x3(src_ref, w_ref):
        if split_k:
            # Large Cp: K = Cp already fills the MXU depth; accumulate the 9
            # per-tap matmuls instead of materializing a (9*Cp, HWp) im2col.
            acc = None
            for dy in range(3):
                for dx in range(3):
                    t = dy * 3 + dx
                    part = jnp.dot(w_ref[:, t * Cp:(t + 1) * Cp],
                                   tap(src_ref, dy, dx),
                                   preferred_element_type=jnp.float32)
                    acc = part if acc is None else acc + part
            return acc
        # Small Cp: one big K = 9*Cp matmul keeps the MXU depth busy.
        patches = jnp.concatenate(
            [tap(src_ref, dy, dx) for dy in range(3) for dx in range(3)],
            axis=0)                                        # (9*Cp, HWp)
        return jnp.dot(w_ref[...], patches,
                       preferred_element_type=jnp.float32)

    for b in range(B):                                     # B is small & static
        # Stage image b into the zero-haloed scratch (compute dtype).
        xpad_ref[:, pad:pad + HWp] = x_ref[b].astype(sdtype)

        # conv1 + bn1 (scale folded into w1) + relu; h stays in VMEM.
        h = jnp.maximum(conv3x3(xpad_ref, w1_ref) + bias1, 0.0)
        if mask_tail is not None:
            h = jnp.where(mask_tail, h, 0.0)   # keep the trailing region zero
        hpad_ref[:, pad:pad + HWp] = h.astype(sdtype)

        # conv2 + bn2 (scale folded into w2) + residual + relu.  The residual
        # is re-read late instead of being kept live across both convs.
        y = conv3x3(hpad_ref, w2_ref) + bias2
        y = y + xpad_ref[:, pad:pad + HWp].astype(jnp.float32)
        o_ref[b] = jnp.maximum(y, 0.0).astype(o_ref.dtype)


# ----------------------------------------------------------------------------
# Wrapper
# ----------------------------------------------------------------------------
def _round_up(x, m):
    return (x + m - 1) // m * m


def _auto_images_per_step(N, Cp, HWp, cbytes):
    # Batch images per grid step for small-channel blocks (amortizes weight
    # re-push and the ~0.35us/step overhead), keeping the parallel grid
    # length >= 2 so both TensorCores (v7x) stay busy.
    if N <= 2 or Cp >= 256:
        return 1
    budget = 24 << 20                    # rough per-core budget for i/o blocks
    best = 1
    for b in range(2, min(N, 8) + 1):
        if N % b != 0 or N // b < 2:
            continue
        if 4 * b * Cp * HWp * cbytes > budget:   # in + out, double-buffered
            continue
        best = b
    return best


def basic_block_forward(x_nchw, params, *, eps=1e-5,
                        compute_dtype=jnp.bfloat16,
                        images_per_step=None, split_k=None):
    """BasicBlock forward (stride=1, downsample=None). Input/output NCHW.

    compute_dtype=bf16 (default) runs the MXU in its native dtype with f32
    accumulation; expect ~1e-2-level divergence from a pure f32 reference.
    Pass compute_dtype=jnp.float32 for tight numerical checks.
    """
    N, C, H, W = x_nchw.shape
    HW = H * W
    in_dtype = x_nchw.dtype
    compute_dtype = jnp.dtype(compute_dtype)
    cbytes = compute_dtype.itemsize

    cout1, cin1 = params["conv1_w"].shape[:2]
    cout2, cin2 = params["conv2_w"].shape[:2]
    assert cin1 == C and cout1 == C and cin2 == C and cout2 == C, (
        "only stride=1, downsample=None (inplanes == planes) is supported")
    # TODO(synk): stride != 1 / downsample path not implemented.

    sublane = 16 if cbytes == 2 else 8
    Cp = _round_up(C, sublane)          # sublane-tile-aligned channels
    HWp = _round_up(HW, 128)            # lane-dense flattened spatial dim
    PAD = _round_up(W + 1, 128)         # halo; lane-aligned so the big staging
                                        # store starts on a vreg boundary
    if split_k is None:
        # K = Cp per tap already fills the MXU depth at >=128 channels; below
        # that the single K = 9*Cp im2col matmul is better.
        split_k = Cp >= 128

    def fold(w, gamma, beta, mean, var):
        # Fold the inference-BN scale into the conv weights; keep only a bias.
        scale = gamma / jnp.sqrt(var + eps)                      # (C,)
        bias = beta - mean * scale                               # (C,)
        wf = jnp.transpose(w, (0, 2, 3, 1)) * scale[:, None, None, None]
        wf = jnp.pad(wf, ((0, Cp - C), (0, 0), (0, 0), (0, Cp - C)))
        wf = wf.reshape(Cp, 9 * Cp).astype(compute_dtype)        # cols: (dy, dx, ci)
        bias = jnp.pad(bias, (0, Cp - C)).reshape(Cp, 1).astype(jnp.float32)
        return wf, bias

    w1f, b1 = fold(params["conv1_w"], params["bn1_gamma"], params["bn1_beta"],
                   params["bn1_mean"], params["bn1_var"])
    w2f, b2 = fold(params["conv2_w"], params["bn2_gamma"], params["bn2_beta"],
                   params["bn2_mean"], params["bn2_var"])

    # NCHW -> (N, C, H*W): pure reshape; channel + lane tails zero-padded.
    x_flat = x_nchw.reshape(N, C, HW).astype(compute_dtype)
    if Cp != C or HWp != HW:
        x_flat = jnp.pad(x_flat, ((0, 0), (0, Cp - C), (0, HWp - HW)))

    B = images_per_step or _auto_images_per_step(N, Cp, HWp, cbytes)
    assert N % B == 0, (N, B)

    # Explicit VMEM budget (double-buffered blocks + scratch + temporaries).
    est = (4 * B * Cp * HWp * cbytes                      # x + out, 2-buffered
           + 4 * Cp * 9 * Cp * cbytes                     # both weights, 2-buffered
           + 2 * Cp * (2 * PAD + HWp) * cbytes            # padded-row scratches
           + (0 if split_k else 9 * Cp * HWp * cbytes)    # materialized im2col
           + 4 * Cp * HWp * 4)                            # f32 temporaries
    vmem_limit = int(min(max(2 * est + (2 << 20), 32 << 20), 64 << 20))

    kernel = functools.partial(_basic_block_kernel, W=W, HW=HW, HWp=HWp,
                               pad=PAD, split_k=split_k)

    out_flat = pl.pallas_call(
        kernel,
        out_shape=jax.ShapeDtypeStruct((N, Cp, HWp), compute_dtype),
        grid=(N // B,),
        in_specs=[
            pl.BlockSpec((B, Cp, HWp), lambda n: (n, 0, 0)),     # x
            pl.BlockSpec((Cp, 9 * Cp), lambda n: (0, 0)),        # w1 (BN folded)
            pl.BlockSpec((Cp, 1), lambda n: (0, 0)),             # b1
            pl.BlockSpec((Cp, 9 * Cp), lambda n: (0, 0)),        # w2 (BN folded)
            pl.BlockSpec((Cp, 1), lambda n: (0, 0)),             # b2
        ],
        out_specs=pl.BlockSpec((B, Cp, HWp), lambda n: (n, 0, 0)),
        scratch_shapes=[
            pltpu.VMEM((Cp, 2 * PAD + HWp), compute_dtype),      # padded x row
            pltpu.VMEM((Cp, 2 * PAD + HWp), compute_dtype),      # padded h row
        ],
        compiler_params=pltpu.CompilerParams(
            dimension_semantics=("parallel",),
            vmem_limit_bytes=vmem_limit),
    )(x_flat, w1f, b1, w2f, b2)

    out = out_flat[:, :C, :HW].reshape(N, C, H, W)
    return out.astype(in_dtype)


# ----------------------------------------------------------------------------
# Pure-JAX reference (for correctness check)
# ----------------------------------------------------------------------------
def _ref_forward(x_nchw, params):
    def conv(x, w):
        return lax.conv_general_dilated(
            x, w, window_strides=(1, 1), padding=((1, 1), (1, 1)),
            dimension_numbers=("NCHW", "OIHW", "NCHW"))

    def bn(x, g, b, m, v, eps=1e-5):
        return ((x - m[None, :, None, None]) / jnp.sqrt(v[None, :, None, None] + eps)
                * g[None, :, None, None] + b[None, :, None, None])

    out = conv(x_nchw, params["conv1_w"])
    out = bn(out, params["bn1_gamma"], params["bn1_beta"],
             params["bn1_mean"], params["bn1_var"])
    out = jnp.maximum(out, 0.0)
    out = conv(out, params["conv2_w"])
    out = bn(out, params["bn2_gamma"], params["bn2_beta"],
             params["bn2_mean"], params["bn2_var"])
    return jnp.maximum(out + x_nchw, 0.0)


# ----------------------------------------------------------------------------
# Main
# ----------------------------------------------------------------------------
if __name__ == "__main__":
    key = jax.random.PRNGKey(0)
    N, C, H, W = 2, 4, 16, 16          # inplanes = planes = 4, stride = 1
    planes = C

    ks = jax.random.split(key, 10)
    x = jax.random.normal(ks[0], (N, C, H, W), jnp.float32)

    params = {
        "conv1_w": jax.random.normal(ks[1], (planes, C, 3, 3), jnp.float32) * 0.2,
        "conv2_w": jax.random.normal(ks[2], (planes, planes, 3, 3), jnp.float32) * 0.2,
        "bn1_gamma": jax.random.uniform(ks[3], (planes,), jnp.float32, 0.5, 1.5),
        "bn1_beta": jax.random.normal(ks[4], (planes,), jnp.float32) * 0.1,
        "bn1_mean": jax.random.normal(ks[5], (planes,), jnp.float32) * 0.1,
        "bn1_var": jax.random.uniform(ks[6], (planes,), jnp.float32, 0.5, 1.5),
        "bn2_gamma": jax.random.uniform(ks[7], (planes,), jnp.float32, 0.5, 1.5),
        "bn2_beta": jnp.zeros((planes,), jnp.float32),
        "bn2_mean": jnp.zeros((planes,), jnp.float32),
        "bn2_var": jnp.ones((planes,), jnp.float32),
    }

    ref = jax.block_until_ready(_ref_forward(x, params))

    # 1) f32 compute, big-K im2col path: tight check against the reference.
    out = jax.block_until_ready(
        basic_block_forward(x, params, compute_dtype=jnp.float32))
    assert out.shape == (N, C, H, W), out.shape
    assert jnp.allclose(out, ref, atol=1e-4, rtol=1e-4), \
        float(jnp.max(jnp.abs(out - ref)))

    # 2) f32 compute, split-K (per-tap accumulation) path.
    out_sk = jax.block_until_ready(
        basic_block_forward(x, params, compute_dtype=jnp.float32, split_k=True))
    assert jnp.allclose(out_sk, ref, atol=1e-4, rtol=1e-4), \
        float(jnp.max(jnp.abs(out_sk - ref)))

    # 3) f32 compute, non-128-multiple spatial size (exercises lane padding /
    #    tail masking of the intermediate).
    x10 = jax.random.normal(ks[8], (N, C, 10, 10), jnp.float32)
    ref10 = jax.block_until_ready(_ref_forward(x10, params))
    out10 = jax.block_until_ready(
        basic_block_forward(x10, params, compute_dtype=jnp.float32))
    assert jnp.allclose(out10, ref10, atol=1e-4, rtol=1e-4), \
        float(jnp.max(jnp.abs(out10 - ref10)))

    # 4) Default bf16 MXU path (bf16 weights/activations, f32 accumulation):
    #    documented looser tolerance vs. the pure-f32 reference.
    out_bf16 = jax.block_until_ready(basic_block_forward(x, params))
    assert out_bf16.shape == (N, C, H, W), out_bf16.shape
    assert jnp.allclose(out_bf16, ref, atol=1.5e-1, rtol=2e-2), \
        float(jnp.max(jnp.abs(out_bf16 - ref)))

    print("KERNEL_OK")
</pallas_src>

<mosaic_0001>
module attributes {stable_mosaic.version = 11 : i64} {
  func.func @_basic_block_kernel(%arg0: i32, %arg1: memref<1x8x256xf32, #tpu.memory_space<vmem>>, %arg2: memref<8x72xf32, #tpu.memory_space<vmem>>, %arg3: memref<8x1xf32, #tpu.memory_space<vmem>>, %arg4: memref<8x72xf32, #tpu.memory_space<vmem>>, %arg5: memref<8x1xf32, #tpu.memory_space<vmem>>, %arg6: memref<1x8x256xf32, #tpu.memory_space<vmem>>, %arg7: memref<8x512xf32, #tpu.memory_space<vmem>>, %arg8: memref<8x512xf32, #tpu.memory_space<vmem>>) attributes {dimension_semantics = [#tpu.dimension_semantics<parallel>], iteration_bounds = array<i64: 2>, scalar_prefetch = 0 : i64, scratch_operands = 2 : i64, tpu.core_type = #tpu.core_type<tc>, window_params = [{transform_indices = @transform_0, window_bounds = array<i64: 1, 8, 256>}, {pipeline_mode = #tpu.pipeline_mode<synchronous>, transform_indices = @transform_1, window_bounds = array<i64: 8, 72>}, {pipeline_mode = #tpu.pipeline_mode<synchronous>, transform_indices = @transform_2, window_bounds = array<i64: 8, 1>}, {pipeline_mode = #tpu.pipeline_mode<synchronous>, transform_indices = @transform_3, window_bounds = array<i64: 8, 72>}, {pipeline_mode = #tpu.pipeline_mode<synchronous>, transform_indices = @transform_4, window_bounds = array<i64: 8, 1>}, {transform_indices = @transform_5, window_bounds = array<i64: 1, 8, 256>}]} {
    %cst = arith.constant 0.000000e+00 : f32
    %0 = vector.broadcast %cst : f32 to vector<8x128xf32>
    %c0 = arith.constant 0 : index
    %c0_0 = arith.constant 0 : index
    %1 = vector.load %arg7[%c0, %c0_0] : memref<8x512xf32, #tpu.memory_space<vmem>>, vector<8x128xf32>
    tpu.vector_store %arg7[%c0, %c0_0], %0 {strides = array<i32>} : memref<8x512xf32, #tpu.memory_space<vmem>>, vector<8x128xf32>,
    %c0_1 = arith.constant 0 : index
    %c384 = arith.constant 384 : index
    %2 = vector.load %arg7[%c0_1, %c384] : memref<8x512xf32, #tpu.memory_space<vmem>>, vector<8x128xf32>
    tpu.vector_store %arg7[%c0_1, %c384], %0 {strides = array<i32>} : memref<8x512xf32, #tpu.memory_space<vmem>>, vector<8x128xf32>,
    %c0_2 = arith.constant 0 : index
    %c0_3 = arith.constant 0 : index
    %3 = vector.load %arg8[%c0_2, %c0_3] : memref<8x512xf32, #tpu.memory_space<vmem>>, vector<8x128xf32>
    tpu.vector_store %arg8[%c0_2, %c0_3], %0 {strides = array<i32>} : memref<8x512xf32, #tpu.memory_space<vmem>>, vector<8x128xf32>,
    %c0_4 = arith.constant 0 : index
    %c384_5 = arith.constant 384 : index
    %4 = vector.load %arg8[%c0_4, %c384_5] : memref<8x512xf32, #tpu.memory_space<vmem>>, vector<8x128xf32>
    tpu.vector_store %arg8[%c0_4, %c384_5], %0 {strides = array<i32>} : memref<8x512xf32, #tpu.memory_space<vmem>>, vector<8x128xf32>,
    %5 = tpu.iota {dimensions = array<i32: 1>} : vector<1x256xi32>
    %c16_i32 = arith.constant 16 : i32
    %c0_i32 = arith.constant 0 : i32
    %6 = arith.cmpi eq, %c16_i32, %c0_i32 : i32
    %c1_i32 = arith.constant 1 : i32
    %7 = arith.select %6, %c1_i32, %c16_i32 : i32
    %8 = vector.broadcast %7 : i32 to vector<1x256xi32>
    %9 = arith.remsi %5, %8 : vector<1x256xi32>
    %c0_i32_6 = arith.constant 0 : i32
    %10 = vector.broadcast %c0_i32_6 : i32 to vector<1x256xi32>
    %11 = arith.cmpi ne, %9, %10 : vector<1x256xi32>
    %c0_i32_7 = arith.constant 0 : i32
    %12 = vector.broadcast %c0_i32_7 : i32 to vector<1x256xi32>
    %13 = arith.cmpi slt, %9, %12 : vector<1x256xi32>
    %c0_i32_8 = arith.constant 0 : i32
    %14 = arith.cmpi slt, %7, %c0_i32_8 : i32
    %15 = vector.broadcast %14 : i1 to vector<1x256xi1>
    %16 = vector.broadcast %15 : vector<1x256xi1> to vector<1x256xi1>
    %17 = arith.xori %13, %16 : vector<1x256xi1>
    %18 = arith.andi %17, %11 : vector<1x256xi1>
    %19 = vector.broadcast %7 : i32 to vector<1x256xi32>
    %20 = arith.addi %9, %19 : vector<1x256xi32>
    %21 = arith.select %18, %20, %9 : vector<1x256xi1>, vector<1x256xi32>
    %c1_i32_9 = arith.constant 1 : i32
    %22 = vector.broadcast %c1_i32_9 : i32 to vector<1x256xi32>
    %23 = arith.cmpi sge, %21, %22 : vector<1x256xi32>
    %24 = vector.shape_cast %23 : vector<1x256xi1> to vector<1x256xi1>
    %25 = vector.broadcast %24 : vector<1x256xi1> to vector<8x256xi1>
    %c14_i32 = arith.constant 14 : i32
    %26 = vector.broadcast %c14_i32 : i32 to vector<1x256xi32>
    %27 = arith.cmpi sle, %21, %26 : vector<1x256xi32>
    %28 = vector.shape_cast %27 : vector<1x256xi1> to vector<1x256xi1>
    %29 = vector.broadcast %28 : vector<1x256xi1> to vector<8x256xi1>
    %c0_10 = arith.constant 0 : index
    %c0_11 = arith.constant 0 : index
    %30 = vector.load %arg3[%c0_10, %c0_11] : memref<8x1xf32, #tpu.memory_space<vmem>>, vector<8x1xf32>
    %31 = vector.shape_cast %30 : vector<8x1xf32> to vector<8x1xf32>
    %32 = vector.broadcast %31 : vector<8x1xf32> to vector<8x256xf32>
    %c0_12 = arith.constant 0 : index
    %c0_13 = arith.constant 0 : index
    %33 = vector.load %arg5[%c0_12, %c0_13] : memref<8x1xf32, #tpu.memory_space<vmem>>, vector<8x1xf32>
    %34 = vector.shape_cast %33 : vector<8x1xf32> to vector<8x1xf32>
    %35 = vector.broadcast %34 : vector<8x1xf32> to vector<8x256xf32>
    %c0_14 = arith.constant 0 : index
    %c0_15 = arith.constant 0 : index
    %c0_16 = arith.constant 0 : index
    %36 = vector.load %arg1[%c0_14, %c0_15, %c0_16] : memref<1x8x256xf32, #tpu.memory_space<vmem>>, vector<1x8x256xf32>
    %37 = vector.shape_cast %36 : vector<1x8x256xf32> to vector<8x256xf32>
    %c0_17 = arith.constant 0 : index
    %c128 = arith.constant 128 : index
    %38 = vector.load %arg7[%c0_17, %c128] : memref<8x512xf32, #tpu.memory_space<vmem>>, vector<8x256xf32>
    tpu.vector_store %arg7[%c0_17, %c128], %37 {strides = array<i32>} : memref<8x512xf32, #tpu.memory_space<vmem>>, vector<8x256xf32>,
    %c0_18 = arith.constant 0 : index
    %c111 = arith.constant 111 : index
    %39 = vector.load %arg7[%c0_18, %c111] : memref<8x512xf32, #tpu.memory_space<vmem>>, vector<8x256xf32>
    %c0_i32_19 = arith.constant 0 : i32
    %40 = arith.sitofp %c0_i32_19 : i32 to f32
    %41 = vector.broadcast %40 : f32 to vector<8x256xf32>
    %42 = arith.select %25, %39, %41 : vector<8x256xi1>, vector<8x256xf32>
    %c0_20 = arith.constant 0 : index
    %c112 = arith.constant 112 : index
    %43 = vector.load %arg7[%c0_20, %c112] : memref<8x512xf32, #tpu.memory_space<vmem>>, vector<8x256xf32>
    %c0_21 = arith.constant 0 : index
    %c113 = arith.constant 113 : index
    %44 = vector.load %arg7[%c0_21, %c113] : memref<8x512xf32, #tpu.memory_space<vmem>>, vector<8x256xf32>
    %c0_i32_22 = arith.constant 0 : i32
    %45 = arith.sitofp %c0_i32_22 : i32 to f32
    %46 = vector.broadcast %45 : f32 to vector<8x256xf32>
    %47 = arith.select %29, %44, %46 : vector<8x256xi1>, vector<8x256xf32>
    %c0_23 = arith.constant 0 : index
    %c127 = arith.constant 127 : index
    %48 = vector.load %arg7[%c0_23, %c127] : memref<8x512xf32, #tpu.memory_space<vmem>>, vector<8x256xf32>
    %c0_i32_24 = arith.constant 0 : i32
    %49 = arith.sitofp %c0_i32_24 : i32 to f32
    %50 = vector.broadcast %49 : f32 to vector<8x256xf32>
    %51 = arith.select %25, %48, %50 : vector<8x256xi1>, vector<8x256xf32>
    %c0_25 = arith.constant 0 : index
    %c128_26 = arith.constant 128 : index
    %52 = vector.load %arg7[%c0_25, %c128_26] : memref<8x512xf32, #tpu.memory_space<vmem>>, vector<8x256xf32>
    %c0_27 = arith.constant 0 : index
    %c129 = arith.constant 129 : index
    %53 = vector.load %arg7[%c0_27, %c129] : memref<8x512xf32, #tpu.memory_space<vmem>>, vector<8x256xf32>
    %c0_i32_28 = arith.constant 0 : i32
    %54 = arith.sitofp %c0_i32_28 : i32 to f32
    %55 = vector.broadcast %54 : f32 to vector<8x256xf32>
    %56 = arith.select %29, %53, %55 : vector<8x256xi1>, vector<8x256xf32>
    %c0_29 = arith.constant 0 : index
    %c143 = arith.constant 143 : index
    %57 = vector.load %arg7[%c0_29, %c143] : memref<8x512xf32, #tpu.memory_space<vmem>>, vector<8x256xf32>
    %c0_i32_30 = arith.constant 0 : i32
    %58 = arith.sitofp %c0_i32_30 : i32 to f32
    %59 = vector.broadcast %58 : f32 to vector<8x256xf32>
    %60 = arith.select %25, %57, %59 : vector<8x256xi1>, vector<8x256xf32>
    %c0_31 = arith.constant 0 : index
    %c144 = arith.constant 144 : index
    %61 = vector.load %arg7[%c0_31, %c144] : memref<8x512xf32, #tpu.memory_space<vmem>>, vector<8x256xf32>
    %c0_32 = arith.constant 0 : index
    %c145 = arith.constant 145 : index
    %62 = vector.load %arg7[%c0_32, %c145] : memref<8x512xf32, #tpu.memory_space<vmem>>, vector<8x256xf32>
    %c0_i32_33 = arith.constant 0 : i32
    %63 = arith.sitofp %c0_i32_33 : i32 to f32
    %64 = vector.broadcast %63 : f32 to vector<8x256xf32>
    %65 = arith.select %29, %62, %64 : vector<8x256xi1>, vector<8x256xf32>
    %66 = tpu.concatenate %42, %43, %47, %51, %52, %56, %60, %61, %65 in 0 : vector<8x256xf32>, vector<8x256xf32>, vector<8x256xf32>, vector<8x256xf32>, vector<8x256xf32>, vector<8x256xf32>, vector<8x256xf32>, vector<8x256xf32>, vector<8x256xf32> -> vector<72x256xf32>
    %c0_34 = arith.constant 0 : index
    %c0_35 = arith.constant 0 : index
    %67 = vector.load %arg2[%c0_34, %c0_35] : memref<8x72xf32, #tpu.memory_space<vmem>>, vector<8x72xf32>
    %cst_36 = arith.constant dense<0.000000e+00> : vector<8x256xf32>
    %68 = tpu.matmul %67, %66, %cst_36 {dimension_numbers = #tpu.dot_dimension_numbers<[1], [0], [0], [1], [0, 0, 1, 1], [], []>} : vector<8x72xf32>, vector<72x256xf32>, vector<8x256xf32> -> vector<8x256xf32>
    %69 = arith.addf %68, %32 : vector<8x256xf32>
    %cst_37 = arith.constant 0.000000e+00 : f32
    %70 = vector.broadcast %cst_37 : f32 to vector<8x256xf32>
    %71 = arith.maximumf %69, %70 : vector<8x256xf32>
    %c0_38 = arith.constant 0 : index
    %c128_39 = arith.constant 128 : index
    %72 = vector.load %arg8[%c0_38, %c128_39] : memref<8x512xf32, #tpu.memory_space<vmem>>, vector<8x256xf32>
    tpu.vector_store %arg8[%c0_38, %c128_39], %71 {strides = array<i32>} : memref<8x512xf32, #tpu.memory_space<vmem>>, vector<8x256xf32>,
    %c0_40 = arith.constant 0 : index
    %c111_41 = arith.constant 111 : index
    %73 = vector.load %arg8[%c0_40, %c111_41] : memref<8x512xf32, #tpu.memory_space<vmem>>, vector<8x256xf32>
    %c0_i32_42 = arith.constant 0 : i32
    %74 = arith.sitofp %c0_i32_42 : i32 to f32
    %75 = vector.broadcast %74 : f32 to vector<8x256xf32>
    %76 = arith.select %25, %73, %75 : vector<8x256xi1>, vector<8x256xf32>
    %c0_43 = arith.constant 0 : index
    %c112_44 = arith.constant 112 : index
    %77 = vector.load %arg8[%c0_43, %c112_44] : memref<8x512xf32, #tpu.memory_space<vmem>>, vector<8x256xf32>
    %c0_45 = arith.constant 0 : index
    %c113_46 = arith.constant 113 : index
    %78 = vector.load %arg8[%c0_45, %c113_46] : memref<8x512xf32, #tpu.memory_space<vmem>>, vector<8x256xf32>
    %c0_i32_47 = arith.constant 0 : i32
    %79 = arith.sitofp %c0_i32_47 : i32 to f32
    %80 = vector.broadcast %79 : f32 to vector<8x256xf32>
    %81 = arith.select %29, %78, %80 : vector<8x256xi1>, vector<8x256xf32>
    %c0_48 = arith.constant 0 : index
    %c127_49 = arith.constant 127 : index
    %82 = vector.load %arg8[%c0_48, %c127_49] : memref<8x512xf32, #tpu.memory_space<vmem>>, vector<8x256xf32>
    %c0_i32_50 = arith.constant 0 : i32
    %83 = arith.sitofp %c0_i32_50 : i32 to f32
    %84 = vector.broadcast %83 : f32 to vector<8x256xf32>
    %85 = arith.select %25, %82, %84 : vector<8x256xi1>, vector<8x256xf32>
    %c0_51 = arith.constant 0 : index
    %c128_52 = arith.constant 128 : index
    %86 = vector.load %arg8[%c0_51, %c128_52] : memref<8x512xf32, #tpu.memory_space<vmem>>, vector<8x256xf32>
    %c0_53 = arith.constant 0 : index
    %c129_54 = arith.constant 129 : index
    %87 = vector.load %arg8[%c0_53, %c129_54] : memref<8x512xf32, #tpu.memory_space<vmem>>, vector<8x256xf32>
    %c0_i32_55 = arith.constant 0 : i32
    %88 = arith.sitofp %c0_i32_55 : i32 to f32
    %89 = vector.broadcast %88 : f32 to vector<8x256xf32>
    %90 = arith.select %29, %87, %89 : vector<8x256xi1>, vector<8x256xf32>
    %c0_56 = arith.constant 0 : index
    %c143_57 = arith.constant 143 : index
    %91 = vector.load %arg8[%c0_56, %c143_57] : memref<8x512xf32, #tpu.memory_space<vmem>>, vector<8x256xf32>
    %c0_i32_58 = arith.constant 0 : i32
    %92 = arith.sitofp %c0_i32_58 : i32 to f32
    %93 = vector.broadcast %92 : f32 to vector<8x256xf32>
    %94 = arith.select %25, %91, %93 : vector<8x256xi1>, vector<8x256xf32>
    %c0_59 = arith.constant 0 : index
    %c144_60 = arith.constant 144 : index
    %95 = vector.load %arg8[%c0_59, %c144_60] : memref<8x512xf32, #tpu.memory_space<vmem>>, vector<8x256xf32>
    %c0_61 = arith.constant 0 : index
    %c145_62 = arith.constant 145 : index
    %96 = vector.load %arg8[%c0_61, %c145_62] : memref<8x512xf32, #tpu.memory_space<vmem>>, vector<8x256xf32>
    %c0_i32_63 = arith.constant 0 : i32
    %97 = arith.sitofp %c0_i32_63 : i32 to f32
    %98 = vector.broadcast %97 : f32 to vector<8x256xf32>
    %99 = arith.select %29, %96, %98 : vector<8x256xi1>, vector<8x256xf32>
    %100 = tpu.concatenate %76, %77, %81, %85, %86, %90, %94, %95, %99 in 0 : vector<8x256xf32>, vector<8x256xf32>, vector<8x256xf32>, vector<8x256xf32>, vector<8x256xf32>, vector<8x256xf32>, vector<8x256xf32>, vector<8x256xf32>, vector<8x256xf32> -> vector<72x256xf32>
    %c0_64 = arith.constant 0 : index
    %c0_65 = arith.constant 0 : index
    %101 = vector.load %arg4[%c0_64, %c0_65] : memref<8x72xf32, #tpu.memory_space<vmem>>, vector<8x72xf32>
    %cst_66 = arith.constant dense<0.000000e+00> : vector<8x256xf32>
    %102 = tpu.matmul %101, %100, %cst_66 {dimension_numbers = #tpu.dot_dimension_numbers<[1], [0], [0], [1], [0, 0, 1, 1], [], []>} : vector<8x72xf32>, vector<72x256xf32>, vector<8x256xf32> -> vector<8x256xf32>
    %103 = arith.addf %102, %35 : vector<8x256xf32>
    %c0_67 = arith.constant 0 : index
    %c128_68 = arith.constant 128 : index
    %104 = vector.load %arg7[%c0_67, %c128_68] : memref<8x512xf32, #tpu.memory_space<vmem>>, vector<8x256xf32>
    %105 = arith.addf %103, %104 : vector<8x256xf32>
    %cst_69 = arith.constant 0.000000e+00 : f32
    %106 = vector.broadcast %cst_69 : f32 to vector<8x256xf32>
    %107 = arith.maximumf %105, %106 : vector<8x256xf32>
    %c0_70 = arith.constant 0 : index
    %c0_71 = arith.constant 0 : index
    %c0_72 = arith.constant 0 : index
    %108 = vector.load %arg6[%c0_70, %c0_71, %c0_72] : memref<1x8x256xf32, #tpu.memory_space<vmem>>, vector<1x8x256xf32>
    %109 = vector.shape_cast %108 : vector<1x8x256xf32> to vector<8x256xf32>
    %110 = vector.shape_cast %107 : vector<8x256xf32> to vector<1x8x256xf32>
    tpu.vector_store %arg6[%c0_70, %c0_71, %c0_72], %110 {strides = array<i32>} : memref<1x8x256xf32, #tpu.memory_space<vmem>>, vector<1x8x256xf32>,
    return
  }
  func.func @transform_0(%arg0: i32) -> (i32, i32, i32) {
    %c0_i32 = arith.constant 0 : i32
    %c0_i32_0 = arith.constant 0 : i32
    %c0_i32_1 = arith.constant 0 : i32
    return %arg0, %c0_i32, %c0_i32_0 : i32, i32, i32
  }
  func.func @transform_1(%arg0: i32) -> (i32, i32) {
    %c0_i32 = arith.constant 0 : i32
    %c0_i32_0 = arith.constant 0 : i32
    %c0_i32_1 = arith.constant 0 : i32
    return %c0_i32, %c0_i32_0 : i32, i32
  }
  func.func @transform_2(%arg0: i32) -> (i32, i32) {
    %c0_i32 = arith.constant 0 : i32
    %c0_i32_0 = arith.constant 0 : i32
    %c0_i32_1 = arith.constant 0 : i32
    return %c0_i32, %c0_i32_0 : i32, i32
  }
  func.func @transform_3(%arg0: i32) -> (i32, i32) {
    %c0_i32 = arith.constant 0 : i32
    %c0_i32_0 = arith.constant 0 : i32
    %c0_i32_1 = arith.constant 0 : i32
    return %c0_i32, %c0_i32_0 : i32, i32
  }
  func.func @transform_4(%arg0: i32) -> (i32, i32) {
    %c0_i32 = arith.constant 0 : i32
    %c0_i32_0 = arith.constant 0 : i32
    %c0_i32_1 = arith.constant 0 : i32
    return %c0_i32, %c0_i32_0 : i32, i32
  }
  func.func @transform_5(%arg0: i32) -> (i32, i32, i32) {
    %c0_i32 = arith.constant 0 : i32
    %c0_i32_0 = arith.constant 0 : i32
    %c0_i32_1 = arith.constant 0 : i32
    return %arg0, %c0_i32, %c0_i32_0 : i32, i32, i32
  }
}

</mosaic_0001>

<bundles_post_ra>
// kernel: tpu_custom_call.1
= control target key start
LH: loop header
LB: loop body
LE: loop exit
PB: predicated region body
PF: predicated region fallthrough
CT: control target
= control target key end

     0   :  { %10 = vsyncpa [#allocation5], 0  ;;  %s1293_s0 = inlined_call_operand.hbm [shape: f32[2,8,256], index: 0, kind: input, shape index: {}]   ;;  %s1294_s1 = inlined_call_operand.vmem [shape: f32[8,72], index: 1, kind: input, shape index: {}]   ;;  %s1295_s2 = inlined_call_operand.vmem [shape: f32[8,1], index: 2, kind: input, shape index: {}]   ;;  %s1296_s3 = inlined_call_operand.vmem [shape: f32[8,72], index: 3, kind: input, shape index: {}]   ;;  %s1297_s4 = inlined_call_operand.vmem [shape: f32[8,1], index: 4, kind: input, shape index: {}]   ;;  %s1298_s5 = inlined_call_operand.hbm [shape: f32[2,8,256], index: 5, kind: output, shape index: {}]  }
   0x1   :  { %12 = vsyncpa [#allocation5 + $0x1], 0 }
   0x2   :  { %13 = vsyncpa [#allocation6], 0 }
   0x3   :  { %15 = vsyncpa [#allocation6 + $0x1], 0  ;;  %s966_s18 = smov 0   ;;  %s968_s19 = smov 0  }
   0x4   :  { %s970_s20 = smov 0   ;;  %s972_s21 = smov 0  }
   0x5 LB: > { %s987_s22 = sadd.s32 4294967295, %s924_s21   ;;  %s706_s23 = sadd.s32 4294967294, %s924_s21   ;;  %s924_s21 = sphi %s972_s21, %s1316_s21   ;;  %s920_s20 = sphi %s970_s20, %s1315_s20   ;;  %s916_s19 = sphi %s968_s19, %s1314_s19   ;;  %s912_s18 = sphi %s966_s18, %s1313_s18  }
   0x6   : > { %s991_s24 = sadd.s32 1, %s924_s21   ;;  %s28_s25 = sadd.s32 1, %s920_s20 }
   0x7   : > { %s25_s26 = ssub.s32 %s924_s21, %s991_s24  ;;  %p35_p0 = scmp.ne.s32.totalorder %s920_s20, %s916_s19 }
   0x8   : > { %p26_p1 = scmp.eq.s32.totalorder %s25_s26, 0  ;;  %p36_p2 = scmp.eq.s32.totalorder %s924_s21, 0 }
   0x9   : > { %p41_p3 = scmp.ne.s32.totalorder %s916_s19, %s912_s18  ;;  %p42_p4 = scmp.eq.s32.totalorder %s987_s22, 0 }
   0xa   : > { %s1003_s27 = scalar_select %p26_p1, %s920_s20, %s28_s25  }
   0xb   : > { %p1005_p5 = por %p36_p2, %p35_p0  ;;  %p1009_p6 = por %p42_p4, %p41_p3 }
   0xc   : > { %p149_p7 = scmp.eq.s32.totalorder %s987_s22, 1  ;;  %p155_p8 = scmp.eq.s32.totalorder %s706_s23, 1 }
   0xd   : > { %p762_p10 = scmp.lt.s32.totalorder %s924_s21, 2  ;;  %s187_s7 = sand.u32 1, %s920_s20  }
   0xe   : > { %p1016_p11 = por %p149_p7, %p35_p0  ;;  %p1020_p12 = por %p155_p8, %p41_p3 }
   0xf   : > { %s748_s8 = sshll.u32 %s924_s21, 4  ;;  %s709_s9 = sshll.u32 %s187_s7, 4 }
  0x10   : > { %s196_s12 = scalar_lea.hbm %s1293_s0, %s748_s8  ;;  %s191_s14 = scalar_lea.vmem [#allocation4], %s709_s9 }
  0x11   : > { %s198_s13 = sshll.u32 %s196_s12, 4  ;;  %s200_s15 = sshll.u32 %s191_s14, 4  ;;  %s199_s13 = int_to_ptr.hbm [resolvable:$true] %s198_s13  ;;  %s201_s15 = int_to_ptr.vmem [resolvable:$true] %s200_s15 }
  0x12   : > { %p1031_p13 = pnand %p762_p10, %p1005_p5  ;;  %p712_p0 = scmp.ge.s32.totalorder %s924_s21, 1 }
  0x13   : > { %p205_p1 = scmp.lt.s32.totalorder %s924_s21, 3  ;;  %s188_s17 = scalar_lea.sflag [#allocation5], %s187_s7 }
  0x14   : > { %s828_s23 = sshra.s32 %s199_s13, 4  ;;  %p832_p3 = pneg %p1031_p13  ;;  %s829_s23 = int_to_ptr.hbm [resolvable:$true] %s828_s23 }
  0x15   : > { %s830_s25 = scalar_lea.hbm %s829_s23, 16  ;;  %s835_s28 = scalar_lea.hbm %s1293_s0, 32 }
  0x16   : > { %p831_p2 = scmp.ne.s32.totalorder %s829_s23, %s830_s25  ;;  %p836_p5 = scmp.lt.s32.totalorder %s829_s23, %s1293_s0 }
  0x17   : > { %p837_p8 = scmp.lt.s32.totalorder %s835_s28, %s830_s25 }
  0x18   : > { %p833_p4 = pnand %p832_p3, %p831_p2 }
  0x19   : > { %p838_p10 = por %p837_p8, %p836_p5 }
  0x1a   : > { %p834_p7 = pneg %p833_p4 }
  0x1c   : > { %p839_p9 = pnand %p838_p10, %p834_p7 }
  0x1e   : > { %842 = shalt.err (!%p839_p9)
}
  0x1f   : > { %757 = dma.hbm_to_vmem [thread:$0]  (!%p1031_p13), %s199_s13, 256, %s201_s15, %s188_s17  }
  0x20   : > { %p206_p2 = pnand %p712_p0, %p205_p1 }
  0x21   : > { %s1052_s7 = sand.u32 (!%p206_p2), 1, %s916_s19  }
  0x22   : > { %209 = sbr.rel (%p206_p2) target bundleno = 629 (0x275), region = 40  ;;  %s713_s11 = sshll.u32 (!%p206_p2), %s1052_s7, 4 }
  0x23   : > { %s212_s12 = scalar_lea.sflag (!%p206_p2), [#allocation5], %s1052_s7  ;;  %s215_s14 = scalar_lea.vmem (!%p206_p2), [#allocation4], %s713_s11 }
  0x27   : > { %903 = dma.done.wait (%p1009_p6), %s212_s12, 256  }
  0x28   : > { %905 = vsyncadd (%p1009_p6), %s212_s12, 4294967040  ;;  %v926_v0 = vmov 0.0   ;;  %s927_s13 = smov 111   ;;  %s928_s15 = smov 112   ;;  %v1066_v1 = vld [vmem:[%s215_s14] sm:$0xff]  ;;  %v1068_v2 = vld [vmem:[%s215_s14 + $0x8] sm:$0xff]  ;;  %v247_v7 = vlaneseq }
  0x29   : > { %383 = vrot.lane.b32.xlu1 %v926_v0, %s927_s13  ;;  %407 = vrot.lane.b32.xlu2 %v926_v0, %s928_s15  ;;  %v806_v3 = vpack.i.bf16 %v1068_v2, %v1066_v1  ;;  %s929_s29 = smov 113   ;;  %s930_s16 = smov 127   ;;  %v811_v4 = vpack.i.bf16 %v1066_v1, %v926_v0  ;;  %vm385_vm0 = vcmask 908288   ;;  %vm409_vm3 = vcmask 916480   ;;  %v286_v38 = vld [vmem:[%s1295_s2] sm:$0xff] }
  0x2a   : > { %379 = vrot.lane.b32.xlu0 %v1066_v1, %s927_s13  ;;  %s931_s17 = smov 1   ;;  %s932_s23 = smov 15   ;;  %v248_v9 = vand.u32 127, %v247_v7  ;;  %vm372_vm4 = vcmask 924672   ;;  %vm359_vm7 = vcmask 1039360   ;;  %v935_v37 = vmov 0  }
  0x2b   : > { %s933_s25 = smov 16   ;;  %s934_s26 = smov 17   ;;  %816 = vset.pattern.permute.xlu1 %v935_v37  ;;  %827 = vset.pattern.permute.xlu0 %v935_v37  ;;  %vm340_vm8 = vcmask 7168   ;;  %vm327_vm9 = vcmask 121856   ;;  %vm398_vm10 = vcmask 130048   ;;  %vm314_vm11 = vcmask 138240  }
  0x2c   : > { %v249_v10 = vadd.s32 128, %v248_v9  ;;  %v254_v14 = vand.u32 15, %v248_v9  ;;  %v414_v54 = vld [vmem:[%s1294_s1] sm:$0xff]  ;;  %vm415_vm12 = vcmask 588800   ;;  %s878_s12 = scalar_lea.hbm %s1298_s5, 32 }
  0x2d   : > { %v567_v18 = vld [vmem:[%s1296_s3] sm:$0xff] }
  0x2e   : > { %v261_v15 = vand.u32 15, %v249_v10  ;;  %vm1118_vm1 = vcmp.le.s32.totalorder %v254_v14, 14  ;;  %vm1134_vm5 = vcmp.ge.s32.totalorder %v254_v14, 1 }
  0x30   : > { %vm1122_vm2 = vcmp.le.s32.totalorder %v261_v15, 14  ;;  %vm1138_vm6 = vcmp.ge.s32.totalorder %v261_v15, 1 }
  0x31   : > { %366 = vrot.lane.b32.xlu2 %v1066_v1, %s929_s29  ;;  %807 = vrot.lane.b32.xlu1 %v806_v3, %s928_s15 }
  0x32   : > { %381 = vrot.lane.b32.xlu0 %v1068_v2, %s927_s13 }
  0x39   : > { %353 = vrot.lane.b32.xlu2 %v1066_v1, %s930_s16  ;;  %370 = vrot.lane.b32.xlu1 %v926_v0, %s929_s29 }
  0x3a   : > { %368 = vrot.lane.b32.xlu0 %v1068_v2, %s929_s29 }
  0x41   : > { %334 = vrot.lane.b32.xlu2 %v926_v0, %s931_s17  ;;  %357 = vrot.lane.b32.xlu1 %v926_v0, %s930_s16 }
  0x42   : > { %355 = vrot.lane.b32.xlu0 %v1068_v2, %s930_s16 }
  0x49   : > { %321 = vrot.lane.b32.xlu2 %v926_v0, %s932_s23  ;;  %338 = vrot.lane.b32.xlu1 %v1068_v2, %s931_s17 }
  0x4a   : > { %336 = vrot.lane.b32.xlu0 %v1066_v1, %s931_s17 }
  0x51   : > { %812 = vrot.lane.b32.xlu2 %v811_v4, %s933_s25  ;;  %325 = vrot.lane.b32.xlu1 %v1068_v2, %s932_s23 }
  0x52   : > { %323 = vrot.lane.b32.xlu0 %v1066_v1, %s932_s23 }
  0x59   : > { %310 = vrot.lane.b32.xlu2 %v1066_v1, %s934_s26  ;;  %308 = vrot.lane.b32.xlu1 %v926_v0, %s934_s26 }
  0x5a   : > { %396 = vrot.lane.b32.xlu0 %v1068_v2, %s933_s25 }
  0x61   : > { %289 = vperm.xlu1 %816, %v286_v38  }
  0x62   : > { %312 = vrot.lane.b32.xlu0 %v1068_v2, %s934_s26 }
  0x69   : > { %539 = vrot.lane.b32.xlu1 %v926_v0, %s927_s13 }
  0x6a   : > { %561 = vrot.lane.b32.xlu0 %v926_v0, %s928_s15 }
  0x71   : > { %493 = vrot.lane.b32.xlu1 %v926_v0, %s931_s17 }
  0x72   : > { %527 = vrot.lane.b32.xlu0 %v926_v0, %s929_s29 }
  0x79   : > { %481 = vrot.lane.b32.xlu1 %v926_v0, %s932_s23 }
  0x7a   : > { %515 = vrot.lane.b32.xlu0 %v926_v0, %s930_s16 }
  0x83   : > { %v408_v5 = vpop.permute.xlu2 %407 }
  0x8b   : > { %v367_v6 = vpop.permute.xlu2 %366 }
  0x93   : > { %v354_v12 = vpop.permute.xlu2 %353 }
  0x9b   : > { %v384_v8 = vpop.permute.xlu1 %383  ;;  %v335_v25 = vpop.permute.xlu2 %334 }
  0x9c   : > { %v380_v11 = vpop.permute.xlu0 %379 }
  0xa3   : > { %v808_v13 = vpop.permute.xlu1 %807  ;;  %v322_v33 = vpop.permute.xlu2 %321 }
  0xa4   : > { %v809_v16 = vunpack.i.l.bf16 %v808_v13  ;;  %v810_v17 = vunpack.i.h.bf16 %v808_v13  ;;  %v382_v20 = vpop.permute.xlu0 %381 }
  0xa5   : > { %v386_v21 = vsel %vm385_vm0, %v380_v11, %v382_v20  ;;  %v387_v22 = vsel %vm385_vm0, %v382_v20, %v384_v8 }
  0xa6   : > { %v410_v23 = vsel %vm409_vm3, %v809_v16, %v810_v17  ;;  %715 = vmatpush.msk.msra.mxu0 %vm1118_vm1, %v386_v21  ;;  %722 = vmatpush.msk.msra.mxu1 %vm1122_vm2, %v387_v22  ;;  %v411_v26 = vsel %vm409_vm3, %v810_v17, %v408_v5 }
  0xa8   : > { %447 = vmatpush.msra.mxu1 %v411_v26  ;;  %427 = vmatpush.msra.mxu0 %v410_v23 }
  0xab   : > { %v371_v24 = vpop.permute.xlu1 %370  ;;  %v813_v40 = vpop.permute.xlu2 %812 }
  0xac   : > { %v369_v29 = vpop.permute.xlu0 %368  ;;  %v815_v45 = vunpack.i.h.bf16 %v813_v40  ;;  %v814_v46 = vunpack.i.l.bf16 %v813_v40 }
  0xad   : > { %v373_v30 = vsel %vm372_vm4, %v367_v6, %v369_v29  ;;  %v374_v31 = vsel %vm372_vm4, %v369_v29, %v371_v24 }
  0xae   : > { %716 = vmatpush.msk.msra.mxu0 %vm1134_vm5, %v373_v30  ;;  %723 = vmatpush.msk.msra.mxu1 %vm1138_vm6, %v374_v31  ;;  %v399_v51 = vsel %vm398_vm10, %v814_v46, %v815_v45 }
  0xb3   : > { %v358_v32 = vpop.permute.xlu1 %357  ;;  %v311_v48 = vpop.permute.xlu2 %310 }
  0xb4   : > { %v356_v34 = vpop.permute.xlu0 %355 }
  0xb5   : > { %v360_v35 = vsel %vm359_vm7, %v354_v12, %v356_v34  ;;  %v361_v36 = vsel %vm359_vm7, %v356_v34, %v358_v32 }
  0xb6   : > { %717 = vmatpush.msk.msra.mxu0 %vm1118_vm1, %v360_v35  ;;  %724 = vmatpush.msk.msra.mxu1 %vm1122_vm2, %v361_v36 }
  0xb8   : > { %430 = vmatpush.msra.mxu0 %v1066_v1  ;;  %450 = vmatpush.msra.mxu1 %v1068_v2 }
  0xbb   : > { %v339_v39 = vpop.permute.xlu1 %338 }
  0xbc   : > { %v337_v41 = vpop.permute.xlu0 %336 }
  0xbd   : > { %v341_v42 = vsel %vm340_vm8, %v335_v25, %v337_v41  ;;  %v342_v43 = vsel %vm340_vm8, %v337_v41, %v339_v39 }
  0xbe   : > { %718 = vmatpush.msk.msra.mxu0 %vm1134_vm5, %v341_v42  ;;  %725 = vmatpush.msk.msra.mxu1 %vm1138_vm6, %v342_v43 }
  0xc3   : > { %v326_v44 = vpop.permute.xlu1 %325 }
  0xc4   : > { %v324_v47 = vpop.permute.xlu0 %323 }
  0xc5   : > { %v328_v49 = vsel %vm327_vm9, %v322_v33, %v324_v47  ;;  %v329_v50 = vsel %vm327_vm9, %v324_v47, %v326_v44 }
  0xc6   : > { %719 = vmatpush.msk.msra.mxu0 %vm1118_vm1, %v328_v49  ;;  %726 = vmatpush.msk.msra.mxu1 %vm1122_vm2, %v329_v50 }
  0xc8   : > { %433 = vmatpush.msra.mxu0 %v399_v51 }
  0xcb   : > { %v309_v52 = vpop.permute.xlu1 %308 }
  0xcc   : > { %v315_v53 = vsel %vm314_vm11, %v309_v52, %v311_v48  ;;  %v397_v55 = vpop.permute.xlu0 %396 }
  0xcd   : > { %720 = vmatpush.msk.msra.mxu0 %vm1134_vm5, %v315_v53  ;;  %v400_v56 = vsel %vm398_vm10, %v815_v45, %v397_v55 }
  0xce   : > { %721 = vmatmul.msk.f32.vlgmr.msra.gmra.mxu0 %vm415_vm12, %v414_v54  ;;  %453 = vmatpush.msra.mxu1 %v400_v56 }
  0xd3   : > { %v290_v59 = vpop.permute.xlu1 %289 }
  0xd4   : > { %v313_v57 = vpop.permute.xlu0 %312 }
  0xd5   : > { %v316_v58 = vsel %vm314_vm11, %v311_v48, %v313_v57 }
  0xd6   : > { %727 = vmatpush.msk.msra.mxu1 %vm1138_vm6, %v316_v58 }
  0xd7   : > { %728 = vmatmul.msk.f32.vlgmr.msra.gmra.mxu1 %vm415_vm12, %v414_v54 }
  0xdb   : > { %v540_v7 = vpop.permute.xlu1 %539 }
  0xdc   : > { %v562_v10 = vpop.permute.xlu0 %561 }
  0xe3   : > { %v494_v9 = vpop.permute.xlu1 %493 }
  0xe4   : > { %v528_v13 = vpop.permute.xlu0 %527 }
  0xeb   : > { %v482_v12 = vpop.permute.xlu1 %481 }
  0xec   : > { %v516_v16 = vpop.permute.xlu0 %515 }
 0x14b   : > { %v436_v60 = vpop.f32.mrf.mxu0 }
 0x14c   : > { %v437_v61 = vadd.f32 %v436_v60, %v290_v59 }
 0x14e   : > { %v459_v62 = vmax.f32 %v437_v61, 0.0 }
 0x150   : > { %523 = vrot.lane.b32.xlu1 %v459_v62, %s929_s29  ;;  %535 = vrot.lane.b32.xlu2 %v459_v62, %s927_s13  ;;  %v822_v6 = vpack.i.bf16 %v459_v62, %v926_v0 }
 0x154   : > { %v456_v63 = vpop.f32.mrf.mxu1 }
 0x155   : > { %v457_v3 = vadd.f32 %v456_v63, %v290_v59 }
 0x157   : > { %v460_v4 = vmax.f32 %v457_v3, 0.0 }
 0x158   : > { %511 = vrot.lane.b32.xlu1 %v459_v62, %s930_s16 }
 0x159   : > { %537 = vrot.lane.b32.xlu0 %v460_v4, %s927_s13  ;;  %v817_v5 = vpack.i.bf16 %v460_v4, %v459_v62 }
 0x15b   : > { %818 = vrot.lane.b32.xlu2 %v817_v5, %s928_s15 }
 0x160   : > { %823 = vrot.lane.b32.xlu1 %v822_v6, %s933_s25 }
 0x161   : > { %497 = vrot.lane.b32.xlu0 %v460_v4, %s931_s17 }
 0x163   : > { %525 = vrot.lane.b32.xlu2 %v460_v4, %s929_s29  ;;  %s749_s29 = sshll.u32 %s987_s22, 4  ;;  %s620_s22 = scalar_lea.sflag [#allocation6], %s1052_s7 }
 0x168   : > { %471 = vrot.lane.b32.xlu1 %v459_v62, %s934_s26 }
 0x169   : > { %485 = vrot.lane.b32.xlu0 %v460_v4, %s932_s23 }
 0x16b   : > { %513 = vrot.lane.b32.xlu2 %v460_v4, %s930_s16 }
 0x171   : > { %469 = vrot.lane.b32.xlu0 %v926_v0, %s934_s26  ;;  %v292_v0 = vld [vmem:[%s1297_s4] sm:$0xff] }
 0x173   : > { %495 = vrot.lane.b32.xlu2 %v459_v62, %s931_s17 }
 0x179   : > { %295 = vperm.xlu0 %827, %v292_v0  }
 0x17b   : > { %483 = vrot.lane.b32.xlu2 %v459_v62, %s932_s23  ;;  %s631_s23 = scalar_lea.hbm %s1298_s5, %s749_s29 }
 0x17c   : > { %s635_s8 = sshll.u32 %s631_s23, 4  ;;  %s636_s8 = int_to_ptr.hbm [resolvable:$true] %s635_s8 }
 0x17d   : > { %s872_s28 = sshra.s32 %s636_s8, 4  ;;  %s873_s28 = int_to_ptr.hbm [resolvable:$true] %s872_s28 }
 0x17e   : > { %s874_s9 = scalar_lea.hbm %s873_s28, 16  ;;  %p879_p0 = scmp.lt.s32.totalorder %s873_s28, %s1298_s5 }
 0x17f   : > { %p875_p6 = scmp.ne.s32.totalorder %s873_s28, %s874_s9  ;;  %p880_p1 = scmp.lt.s32.totalorder %s878_s12, %s874_s9 }
 0x181   : > { %p876_p9 = pnand %p875_p6, %p1016_p11  ;;  %p881_p3 = por %p880_p1, %p879_p0 }
 0x183   : > { %551 = vrot.lane.b32.xlu2 %v460_v4, %s933_s25  ;;  %s242_s25 = scalar_lea.vmem [#allocation7], %s713_s11  ;;  %p877_p13 = pneg %p876_p9 }
 0x185   : > { %p882_p4 = pnand %p881_p3, %p877_p13 }
 0x18b   : > { %473 = vrot.lane.b32.xlu2 %v460_v4, %s934_s26  ;;  %s633_s26 = sshll.u32 %s242_s25, 4  ;;  %s634_s26 = int_to_ptr.vmem [resolvable:$true] %s633_s26 }
 0x1aa   : > { %v536_v8 = vpop.permute.xlu2 %535 }
 0x1b5   : > { %v819_v11 = vpop.permute.xlu2 %818 }
 0x1b6   : > { %v821_v21 = vunpack.i.h.bf16 %v819_v11  ;;  %v820_v22 = vunpack.i.l.bf16 %v819_v11 }
 0x1b8   : > { %v563_v29 = vsel %vm409_vm3, %v820_v22, %v821_v21  ;;  %v564_v30 = vsel %vm409_vm3, %v821_v21, %v562_v10 }
 0x1bd   : > { %v526_v14 = vpop.permute.xlu2 %525 }
 0x1be   : > { %v530_v32 = vsel %vm372_vm4, %v526_v14, %v528_v13 }
 0x1c2   : > { %v524_v15 = vpop.permute.xlu1 %523 }
 0x1c3   : > { %v529_v31 = vsel %vm372_vm4, %v524_v15, %v526_v14 }
 0x1c5   : > { %v514_v17 = vpop.permute.xlu2 %513 }
 0x1c6   : > { %v518_v34 = vsel %vm359_vm7, %v514_v17, %v516_v16 }
 0x1ca   : > { %v512_v20 = vpop.permute.xlu1 %511 }
 0x1cb   : > { %v538_v23 = vpop.permute.xlu0 %537  ;;  %v517_v33 = vsel %vm359_vm7, %v512_v20, %v514_v17 }
 0x1cc   : > { %v541_v24 = vsel %vm385_vm0, %v536_v8, %v538_v23  ;;  %v542_v25 = vsel %vm385_vm0, %v538_v23, %v540_v7 }
 0x1cd   : > { %729 = vmatpush.msk.msra.mxu2 %vm1118_vm1, %v541_v24  ;;  %v496_v26 = vpop.permute.xlu2 %495  ;;  %736 = vmatpush.msk.msra.mxu3 %vm1122_vm2, %v542_v25 }
 0x1ce   : > { %v499_v40 = vsel %vm340_vm8, %v494_v9, %v496_v26 }
 0x1cf   : > { %579 = vmatpush.msra.mxu2 %v563_v29  ;;  %599 = vmatpush.msra.mxu3 %v564_v30 }
 0x1d1   : > { %730 = vmatpush.msk.msra.mxu2 %vm1134_vm5, %v529_v31  ;;  %737 = vmatpush.msk.msra.mxu3 %vm1138_vm6, %v530_v32 }
 0x1d2   : > { %v824_v35 = vpop.permute.xlu1 %823 }
 0x1d3   : > { %v498_v36 = vpop.permute.xlu0 %497  ;;  %731 = vmatpush.msk.msra.mxu2 %vm1118_vm1, %v517_v33  ;;  %738 = vmatpush.msk.msra.mxu3 %vm1122_vm2, %v518_v34  ;;  %v826_v38 = vunpack.i.h.bf16 %v824_v35  ;;  %v825_v39 = vunpack.i.l.bf16 %v824_v35 }
 0x1d4   : > { %v500_v41 = vsel %vm340_vm8, %v496_v26, %v498_v36 }
 0x1d5   : > { %v484_v37 = vpop.permute.xlu2 %483  ;;  %582 = vmatpush.msra.mxu2 %v459_v62  ;;  %602 = vmatpush.msra.mxu3 %v460_v4  ;;  %v553_v43 = vsel %vm398_vm10, %v825_v39, %v826_v38 }
 0x1d6   : > { %v487_v42 = vsel %vm327_vm9, %v482_v12, %v484_v37 }
 0x1d7   : > { %732 = vmatpush.msk.msra.mxu2 %vm1134_vm5, %v499_v40  ;;  %739 = vmatpush.msk.msra.mxu3 %vm1138_vm6, %v500_v41 }
 0x1d9   : > { %733 = vmatpush.msk.msra.mxu2 %vm1118_vm1, %v487_v42 }
 0x1da   : > { %v472_v48 = vpop.permute.xlu1 %471 }
 0x1db   : > { %v486_v44 = vpop.permute.xlu0 %485  ;;  %585 = vmatpush.msra.mxu2 %v553_v43 }
 0x1dc   : > { %v488_v45 = vsel %vm327_vm9, %v484_v37, %v486_v44 }
 0x1dd   : > { %v552_v46 = vpop.permute.xlu2 %551  ;;  %740 = vmatpush.msk.msra.mxu3 %vm1122_vm2, %v488_v45 }
 0x1de   : > { %v554_v47 = vsel %vm398_vm10, %v826_v38, %v552_v46 }
 0x1df   : > { %605 = vmatpush.msra.mxu3 %v554_v47 }
 0x1e3   : > { %v470_v49 = vpop.permute.xlu0 %469 }
 0x1e4   : > { %v475_v50 = vsel %vm314_vm11, %v470_v49, %v472_v48 }
 0x1e5   : > { %v474_v51 = vpop.permute.xlu2 %473  ;;  %734 = vmatpush.msk.msra.mxu2 %vm1134_vm5, %v475_v50 }
 0x1e6   : > { %v476_v52 = vsel %vm314_vm11, %v472_v48, %v474_v51  ;;  %735 = vmatmul.msk.f32.vlgmr.msra.gmra.mxu2 %vm415_vm12, %v567_v18 }
 0x1e7   : > { %741 = vmatpush.msk.msra.mxu3 %vm1138_vm6, %v476_v52 }
 0x1e8   : > { %742 = vmatmul.msk.f32.vlgmr.msra.gmra.mxu3 %vm415_vm12, %v567_v18 }
 0x1eb   : > { %v296_v19 = vpop.permute.xlu0 %295 }
 0x269   : > { %v588_v53 = vpop.f32.mrf.mxu2 }
 0x26a   : > { %v589_v54 = vadd.f32 %v588_v53, %v296_v19 }
 0x26b   : > { %v608_v27 = vpop.f32.mrf.mxu3 }
 0x26c   : > { %v613_v55 = vadd.f32 %v589_v54, %v1066_v1  ;;  %v609_v56 = vadd.f32 %v608_v27, %v296_v19 }
 0x26e   : > { %v615_v28 = vmax.f32 %v613_v55, 0.0  ;;  %v614_v57 = vadd.f32 %v609_v56, %v1068_v2 }
 0x270   : > { %617 = vst [vmem:[%s242_s25] sm:$0xff] %v615_v28  ;;  %v616_v58 = vmax.f32 %v614_v57, 0.0 }
 0x272   : > { %618 = vst [vmem:[%s242_s25 + $0x8] sm:$0xff] %v616_v58 }
 0x273   : > { %885 = shalt.err (!%p882_p4)
}
 0x274   : > { %752 = dma.vmem_to_hbm [thread:$0]  (%p1016_p11), %s634_s26, 256, %s636_s8, %s620_s22  }
 0x275 PF: > { %s647_s7 = sand.u32 1, %s912_s18   ;;  %p1312_p7 = scmp.ge.s32.totalorder %s924_s21, 2 }
 0x276   : > { %s648_s15 = scalar_lea.sflag [#allocation6], %s647_s7 }
 0x277   : > { %p759_p5 = pnand %p1312_p7, %p1020_p12 }
 0x279   : > { %p760_p8 = pneg %p759_p5 }
 0x27b   : > { %907 = dma.done.wait (%p760_p8), %s648_s15, 256  }
 0x27c   : > { %909 = vsyncadd (%p760_p8), %s648_s15, 4294967040  ;;  %p18_p10 = scmp.ge.s32.totalorder %s991_s24, 4   ;;  %s1313_s18 = smov %s916_s19 }
 0x27d   : > { %s1314_s19 = smov %s920_s20  ;;  %s1315_s20 = smov %s1003_s27 }
 0x27e   : > { %s1316_s21 = smov %s991_s24  ;;  %20 = sbr.rel (!%p18_p10) target bundleno = 5 (0x5), region = 85 }
 0x283   :  { %654 = vsyncpa [#allocation5], 1 }
 0x284   :  { %656 = vsyncpa [#allocation5 + $0x1], 1 }
 0x285   :  { %657 = vsyncpa [#allocation6], 1 }
 0x286   :  { %659 = vsyncpa [#allocation6 + $0x1], 1 }

</bundles_post_ra>
